<compile_context>
chip_gen: v7x
topology: tpu7x:2x2x1
jax: 0.10.0
libtpu: 0.0.40
codegen_flags: <defaults>
</compile_context>

<pallas_src>
import functools

import jax
import jax.numpy as jnp
from jax.experimental import pallas as pl
from jax.experimental.pallas import tpu as pltpu


def _round_up(x: int, m: int) -> int:
    return (x + m - 1) // m * m


def _my_loss_kernel(x_ref, lab_ref, loss_ref, acc_ref, *,
                    n_rows: int, n_cols: int, tile_rows: int, tiles_per_core: int):
    core = pl.program_id(0)      # TensorCore split axis ("parallel")
    i = pl.program_id(1)         # per-core row-tile axis ("arbitrary", reduction)

    @pl.when(i == 0)
    def _init():
        acc_ref[...] = jnp.zeros_like(acc_ref)

    x = x_ref[...].astype(jnp.float32)           # (TN, C_pad) upcast in-vreg
    labels = lab_ref[...]                        # (TN, 1) int32
    tn, c_pad = x.shape

    col = jax.lax.broadcasted_iota(jnp.int32, (tn, c_pad), 1)
    if c_pad != n_cols:
        # Lanes >= n_cols hold undefined VMEM data (partial block): force huge-negative
        # so exp -> 0 and they never pollute the row sums.
        x = jnp.where(col < n_cols, x, jnp.finfo(jnp.float32).min)

    # Gather outputs[r, labels[r]] (labels < n_cols, never a pad lane): pure VPU select+sum.
    gathered = jnp.sum(jnp.where(col == labels, x, 0.0), axis=1, keepdims=True)   # (TN,1)

    # log(sum(exp(x))) -- matches torch (intentionally no max-subtraction).
    lse = jnp.log(jnp.sum(jnp.exp(x), axis=1, keepdims=True))                     # (TN,1)

    # Mask rows past the end of the batch (partial last tile / duplicated clamped tile).
    tile_idx = core * tiles_per_core + i
    row = tile_idx * tile_rows + jax.lax.broadcasted_iota(jnp.int32, (tn, 1), 0)
    contrib = jnp.where(row < n_rows, lse - gathered, 0.0)                        # (TN,1)

    acc_ref[...] += contrib      # per-row accumulate; no per-step cross-sublane reduce

    @pl.when(i == pl.num_programs(1) - 1)
    def _finalize():
        partial = jnp.sum(acc_ref[...]) * jnp.float32(1.0 / n_rows)
        loss_ref[...] = jnp.broadcast_to(partial, loss_ref.shape).astype(jnp.float32)


def my_loss(outputs, labels, *, max_tile_bytes: int = 8 * 1024 * 1024):
    """outputs: (N, C) float array, labels: (N,) integer class ids. Returns scalar f32."""
    n, c = outputs.shape
    itemsize = outputs.dtype.itemsize
    c_pad = _round_up(c, 128)    # lane-dense block width (partial block, no HBM pad copy)

    # Row tile: multiple of 8, sized from the byte budget (Pallas double-buffers it).
    rows_budget = max(8, (max_tile_bytes // (c_pad * itemsize)) // 8 * 8)
    tn = min(_round_up(n, 8), rows_budget)
    n_tiles = -(-n // tn)
    tiles_per_core = -(-n_tiles // 2)    # 2 TensorCores on v7x; harmless on v5e/v6e

    lab = labels.reshape(n, 1).astype(jnp.int32)

    def in_index(core, i):
        # Clamp the (possibly) out-of-range tail tile of core 1; its rows are masked
        # in-kernel via the unclamped global row index, so nothing is double counted.
        t = jnp.minimum(core * tiles_per_core + i, n_tiles - 1)
        return (t, 0)

    kernel = functools.partial(
        _my_loss_kernel, n_rows=n, n_cols=c, tile_rows=tn, tiles_per_core=tiles_per_core)

    cost = pl.CostEstimate(
        flops=4 * n * c_pad,
        transcendentals=n * c_pad,
        bytes_accessed=n * c * itemsize + n * 4 + 2 * 128 * 4,
    )

    out = pl.pallas_call(
        kernel,
        out_shape=jax.ShapeDtypeStruct((1, 2 * 128), jnp.float32),
        grid_spec=pltpu.PrefetchScalarGridSpec(
            num_scalar_prefetch=0,
            grid=(2, tiles_per_core),
            in_specs=[
                pl.BlockSpec((tn, c_pad), in_index),
                pl.BlockSpec((tn, 1), in_index),
            ],
            out_specs=pl.BlockSpec((1, 128), lambda core, i: (0, core)),
            scratch_shapes=[pltpu.VMEM((tn, 1), jnp.float32)],
        ),
        compiler_params=pltpu.CompilerParams(
            dimension_semantics=("parallel", "arbitrary"),
            vmem_limit_bytes=48 * 1024 * 1024,
        ),
        cost_estimate=cost,
    )(outputs, lab)
    # Per-core partials are already scaled by 1/N; the loss is their sum.
    return out[0, 0] + out[0, 128]


if __name__ == "__main__":
    key = jax.random.PRNGKey(0)
    k1, k2, k3, k4, k5, k6 = jax.random.split(key, 6)

    # Reference = exact torch math: (N,1) + (N,) broadcast to (N,N), then mean.
    def ref_loss(outputs, labels):
        n = outputs.shape[0]
        gathered = outputs[jnp.arange(n), labels]
        lse = jnp.log(jnp.sum(jnp.exp(outputs), axis=1))
        return jnp.mean((-gathered)[:, None] + lse[None, :])

    # Case 1: small aligned-ish shapes.
    N, C = 8, 32
    outputs = jax.random.normal(k1, (N, C), dtype=jnp.float32)
    labels = jax.random.randint(k2, (N,), 0, C, dtype=jnp.int32)
    loss = my_loss(outputs, labels)
    jax.block_until_ready(loss)
    assert jnp.allclose(loss, ref_loss(outputs, labels), rtol=1e-5, atol=1e-5), (
        loss, ref_loss(outputs, labels))

    # Case 2: ragged shapes (exercise row/column partial blocks + masking).
    N2, C2 = 13, 200
    outputs2 = jax.random.normal(k3, (N2, C2), dtype=jnp.float32)
    labels2 = jax.random.randint(k4, (N2,), 0, C2, dtype=jnp.int32)
    loss2 = my_loss(outputs2, labels2)
    jax.block_until_ready(loss2)
    assert jnp.allclose(loss2, ref_loss(outputs2, labels2), rtol=1e-5, atol=1e-5), (
        loss2, ref_loss(outputs2, labels2))

    # Case 3: force tiny tiles to exercise multi-tile grid, core split and tile clamping.
    N3, C3 = 40, 50
    outputs3 = jax.random.normal(k5, (N3, C3), dtype=jnp.float32)
    labels3 = jax.random.randint(k6, (N3,), 0, C3, dtype=jnp.int32)
    loss3 = my_loss(outputs3, labels3, max_tile_bytes=4096)
    jax.block_until_ready(loss3)
    assert jnp.allclose(loss3, ref_loss(outputs3, labels3), rtol=1e-5, atol=1e-5), (
        loss3, ref_loss(outputs3, labels3))

    print("KERNEL_OK")
</pallas_src>

<mosaic_0001>
module attributes {stable_mosaic.version = 11 : i64} {
  func.func @_my_loss_kernel(%arg0: i32, %arg1: i32, %arg2: memref<8x128xf32, #tpu.memory_space<vmem>>, %arg3: memref<8x1xi32, #tpu.memory_space<vmem>>, %arg4: memref<1x128xf32, #tpu.memory_space<vmem>>, %arg5: memref<8x1xf32, #tpu.memory_space<vmem>>) attributes {dimension_semantics = [#tpu.dimension_semantics<parallel>, #tpu.dimension_semantics<arbitrary>], iteration_bounds = array<i64: 2, 1>, scalar_prefetch = 0 : i64, scratch_operands = 1 : i64, tpu.core_type = #tpu.core_type<tc>, window_params = [{transform_indices = @transform_0, window_bounds = array<i64: 8, 128>}, {transform_indices = @transform_1, window_bounds = array<i64: 8, 1>}, {transform_indices = @transform_2, window_bounds = array<i64: 1, 128>}]} {
    %c0_i32 = arith.constant 0 : i32
    %0 = arith.cmpi eq, %arg1, %c0_i32 : i32
    %1 = arith.extui %0 : i1 to i32
    %c0_i32_0 = arith.constant 0 : i32
    %2 = arith.cmpi ne, %1, %c0_i32_0 : i32
    scf.if %2 {
      %cst_15 = arith.constant 0.000000e+00 : f32
      %37 = vector.broadcast %cst_15 : f32 to vector<8x1xf32>
      %c0_16 = arith.constant 0 : index
      %c0_17 = arith.constant 0 : index
      %38 = vector.load %arg5[%c0_16, %c0_17] : memref<8x1xf32, #tpu.memory_space<vmem>>, vector<8x1xf32>
      tpu.vector_store %arg5[%c0_16, %c0_17], %37 {strides = array<i32>} : memref<8x1xf32, #tpu.memory_space<vmem>>, vector<8x1xf32>,
    } else {
    }
    %c0 = arith.constant 0 : index
    %c0_1 = arith.constant 0 : index
    %3 = vector.load %arg2[%c0, %c0_1] : memref<8x128xf32, #tpu.memory_space<vmem>>, vector<8x128xf32>
    %c0_2 = arith.constant 0 : index
    %c0_3 = arith.constant 0 : index
    %4 = vector.load %arg3[%c0_2, %c0_3] : memref<8x1xi32, #tpu.memory_space<vmem>>, vector<8x1xi32>
    %5 = tpu.iota {dimensions = array<i32: 1>} : vector<8x128xi32>
    %c32_i32 = arith.constant 32 : i32
    %6 = vector.broadcast %c32_i32 : i32 to vector<8x128xi32>
    %7 = arith.cmpi slt, %5, %6 : vector<8x128xi32>
    %cst = arith.constant -3.40282347E+38 : f32
    %8 = vector.broadcast %cst : f32 to vector<8x128xf32>
    %9 = arith.select %7, %3, %8 : vector<8x128xi1>, vector<8x128xf32>
    %10 = vector.broadcast %4 : vector<8x1xi32> to vector<8x128xi32>
    %11 = arith.cmpi eq, %5, %10 : vector<8x128xi32>
    %cst_4 = arith.constant 0.000000e+00 : f32
    %12 = vector.broadcast %cst_4 : f32 to vector<8x128xf32>
    %13 = arith.select %11, %9, %12 : vector<8x128xi1>, vector<8x128xf32>
    %cst_5 = arith.constant dense<0.000000e+00> : vector<8xf32>
    %14 = vector.multi_reduction <add>, %13, %cst_5 [1] : vector<8x128xf32> to vector<8xf32>
    %15 = vector.shape_cast %14 : vector<8xf32> to vector<8x1xf32>
    %16 = math.exp %9 : vector<8x128xf32>
    %cst_6 = arith.constant dense<0.000000e+00> : vector<8xf32>
    %17 = vector.multi_reduction <add>, %16, %cst_6 [1] : vector<8x128xf32> to vector<8xf32>
    %18 = vector.shape_cast %17 : vector<8xf32> to vector<8x1xf32>
    %19 = math.log %18 : vector<8x1xf32>
    %c1_i32 = arith.constant 1 : i32
    %20 = arith.muli %arg0, %c1_i32 : i32
    %21 = arith.addi %20, %arg1 : i32
    %c8_i32 = arith.constant 8 : i32
    %22 = arith.muli %21, %c8_i32 : i32
    %23 = tpu.iota {dimensions = array<i32: 0>} : vector<8x1xi32>
    %24 = vector.broadcast %22 : i32 to vector<8x1xi32>
    %25 = arith.addi %24, %23 : vector<8x1xi32>
    %c8_i32_7 = arith.constant 8 : i32
    %26 = vector.broadcast %c8_i32_7 : i32 to vector<8x1xi32>
    %27 = arith.cmpi slt, %25, %26 : vector<8x1xi32>
    %28 = arith.subf %19, %15 : vector<8x1xf32>
    %cst_8 = arith.constant 0.000000e+00 : f32
    %29 = vector.broadcast %cst_8 : f32 to vector<8x1xf32>
    %30 = arith.select %27, %28, %29 : vector<8x1xi1>, vector<8x1xf32>
    %c0_9 = arith.constant 0 : index
    %c0_10 = arith.constant 0 : index
    %31 = vector.load %arg5[%c0_9, %c0_10] : memref<8x1xf32, #tpu.memory_space<vmem>>, vector<8x1xf32>
    %32 = arith.addf %31, %30 : vector<8x1xf32>
    %c0_11 = arith.constant 0 : index
    %c0_12 = arith.constant 0 : index
    %33 = vector.load %arg5[%c0_11, %c0_12] : memref<8x1xf32, #tpu.memory_space<vmem>>, vector<8x1xf32>
    tpu.vector_store %arg5[%c0_11, %c0_12], %32 {strides = array<i32>} : memref<8x1xf32, #tpu.memory_space<vmem>>, vector<8x1xf32>,
    %c0_i32_13 = arith.constant 0 : i32
    %34 = arith.cmpi eq, %arg1, %c0_i32_13 : i32
    %35 = arith.extui %34 : i1 to i32
    %c0_i32_14 = arith.constant 0 : i32
    %36 = arith.cmpi ne, %35, %c0_i32_14 : i32
    scf.if %36 {
      %c0_15 = arith.constant 0 : index
      %c0_16 = arith.constant 0 : index
      %37 = vector.load %arg5[%c0_15, %c0_16] : memref<8x1xf32, #tpu.memory_space<vmem>>, vector<8x1xf32>
      %38 = vector.shape_cast %37 : vector<8x1xf32> to vector<1x8x1xf32>
      %cst_17 = arith.constant dense<0.000000e+00> : vector<1xf32>
      %39 = vector.multi_reduction <add>, %38, %cst_17 [1, 2] : vector<1x8x1xf32> to vector<1xf32>
      %40 = vector.shape_cast %39 : vector<1xf32> to vector<1x1x1xf32>
      %41 = vector.extract %40[0, 0, 0] : f32 from vector<1x1x1xf32>
      %cst_18 = arith.constant 1.250000e-01 : f32
      %42 = arith.mulf %41, %cst_18 : f32
      %43 = vector.broadcast %42 : f32 to vector<1x128xf32>
      %c0_19 = arith.constant 0 : index
      %c0_20 = arith.constant 0 : index
      %44 = vector.load %arg4[%c0_19, %c0_20] : memref<1x128xf32, #tpu.memory_space<vmem>>, vector<1x128xf32>
      tpu.vector_store %arg4[%c0_19, %c0_20], %43 {strides = array<i32>} : memref<1x128xf32, #tpu.memory_space<vmem>>, vector<1x128xf32>,
    } else {
    }
    return
  }
  func.func @transform_0(%arg0: i32, %arg1: i32) -> (i32, i32) {
    %c1_i32 = arith.constant 1 : i32
    %0 = arith.muli %arg0, %c1_i32 : i32
    %1 = arith.addi %0, %arg1 : i32
    %c0_i32 = arith.constant 0 : i32
    %2 = arith.minsi %1, %c0_i32 : i32
    %c0_i32_0 = arith.constant 0 : i32
    %c0_i32_1 = arith.constant 0 : i32
    return %2, %c0_i32_0 : i32, i32
  }
  func.func @transform_1(%arg0: i32, %arg1: i32) -> (i32, i32) {
    %c1_i32 = arith.constant 1 : i32
    %0 = arith.muli %arg0, %c1_i32 : i32
    %1 = arith.addi %0, %arg1 : i32
    %c0_i32 = arith.constant 0 : i32
    %2 = arith.minsi %1, %c0_i32 : i32
    %c0_i32_0 = arith.constant 0 : i32
    %c0_i32_1 = arith.constant 0 : i32
    return %2, %c0_i32_0 : i32, i32
  }
  func.func @transform_2(%arg0: i32, %arg1: i32) -> (i32, i32) {
    %c0_i32 = arith.constant 0 : i32
    %c0_i32_0 = arith.constant 0 : i32
    return %c0_i32, %arg0 : i32, i32
  }
}

</mosaic_0001>

<bundles_post_ra>
// kernel: tpu_custom_call.1
= control target key start
LH: loop header
LB: loop body
LE: loop exit
PB: predicated region body
PF: predicated region fallthrough
CT: control target
= control target key end

     0   :  { %7 = vsyncpa [#allocation4], 0  ;;  %s650_s0 = inlined_call_operand.vmem [shape: f32[8,32], index: 0, kind: input, shape index: {}]   ;;  %s651_s1 = inlined_call_operand.vmem [shape: s32[8,1], index: 1, kind: input, shape index: {}]   ;;  %s652_s2 = inlined_call_operand.hbm [shape: f32[1,256], index: 2, kind: output, shape index: {}]  }
   0x1   :  { %9 = vsyncpa [#allocation4 + $0x1], 0  ;;  %s531_s9 = smov 0   ;;  %s533_s10 = smov 0  }
   0x2   :  { %s535_s11 = smov 0   ;;  %s537_s12 = smov 0  }
   0x3   :  { %s539_s13 = smov 0   ;;  %s541_s14 = smov 0  }
   0x4 LB: > { %s352_s15 = sadd.s32 4294967295, %s511_s14   ;;  %s353_s16 = sadd.s32 4294967294, %s511_s14   ;;  %s511_s14 = sphi %s541_s14, %s15_s14   ;;  %s507_s13 = sphi %s539_s13, %s659_s13   ;;  %s503_s12 = sphi %s537_s12, %s658_s12   ;;  %s499_s11 = sphi %s535_s11, %s657_s11   ;;  %s495_s10 = sphi %s533_s10, %s656_s10   ;;  %s491_s9 = sphi %s531_s9, %s655_s9  }
   0x5   : > { %s27_s17 = sadd.s32 1, %s507_s13  ;;  %s98_s18 = sadd.s32 1, %s499_s11 }
   0x6   : > { %p29_p0 = scmp.ge.s32.totalorder %s27_s17, 2  ;;  %p108_p1 = scmp.ne.s32.totalorder %s499_s11, %s495_s10 }
   0x7   : > { %p109_p2 = scmp.eq.s32.totalorder %s352_s15, 1  ;;  %p114_p3 = scmp.ne.s32.totalorder %s495_s10, %s491_s9 }
   0x8   : > { %s661_s17 = smov (%p29_p0, %s27_s17), 0  ;;  %p115_p5 = scmp.eq.s32.totalorder %s353_s16, 1 }
   0x9   : > { %p571_p4 = por %p109_p2, %p108_p1  ;;  %s95_s20 = ssub.s32 %s507_s13, %s661_s17 }
   0xa   : > { %p356_p6 = scmp.ge.s32.totalorder %s511_s14, 1  ;;  %p96_p7 = scmp.eq.s32.totalorder %s95_s20, 0 }
   0xb   : > { %p578_p8 = por %p115_p5, %p114_p3  ;;  %p159_p9 = scmp.lt.s32.totalorder %s511_s14, 3 }
   0xc   : > { %s584_s22 = scalar_select %p96_p7, %s499_s11, %s98_s18  }
   0xd   : > { %p160_p10 = pnand %p356_p6, %p159_p9 }
   0xe   : > { %p190_p11 = scmp.lt.s32.totalorder (!%p160_p10), %s503_s12, 0  ;;  %v513_v0 = vmov (!%p160_p10), 0   ;;  %v217_v2 = vlaneseq (!%p160_p10)  ;;  %vm213_vm2 = vcmask (!%p160_p10), 7168   ;;  %v514_v10 = vmov (!%p160_p10), 0.0   ;;  %s365_s3 = sshll.u32 (!%p160_p10), %s503_s12, 3 }
   0xf   : > { %163 = sbr.rel (%p160_p10) target bundleno = 535 (0x217), region = 28  ;;  %428 = vset.pattern.permute.xlu0 (!%p160_p10), %v513_v0  ;;  %214 = vst.msk [vmem:[#allocation2] sm:$0xff] (!%p160_p10), %vm213_vm2, %v514_v10  ;;  %v238_v13 = vstv (!%p160_p10), %s365_s3  ;;  %s187_s4 = sand.u32 (!%p160_p10), 1, %s495_s10  }
  0x10   : > { %v218_v3 = vand.u32 (!%p160_p10), 127, %v217_v2  ;;  %v237_v12 = vshrl.u32 (!%p160_p10), %v217_v2, 7  ;;  %s188_s5 = scalar_lea.vmem (!%p160_p10), [#allocation3], %s187_s4  ;;  %s366_s7 = sshll.u32 (!%p160_p10), %s503_s12, 4 }
  0x11   : > { %s277_s6 = sshll.u32 (!%p160_p10), %s188_s5, 4  ;;  %s603_s20 = scalar_lea.hbm (!%p160_p10), %s652_s2, %s366_s7  ;;  %s605_s6 = int_to_ptr.vmem [resolvable:$true] %s277_s6 }
  0x12   : > { %vm219_vm0 = vcmp.lt.s32.totalorder (!%p160_p10), %v218_v3, 32  ;;  %v239_v15 = vadd.s32 (!%p160_p10), %v238_v13, %v237_v12 }
  0x14   : > { %vm240_vm3 = vcmp.lt.s32.totalorder (!%p160_p10), %v239_v15, 8 }
  0x16   : > { %s191_s23 = scalar_select %p190_p11, %s503_s12, 0  ;;  %v243_v19 = vld [vmem:[#allocation2] sm:$0xff] }
  0x17   : > { %s515_s12 = smov [#allocation3]  }
  0x18   : > { %s663_s23 = smov (!%p190_p11, %s191_s23), 0  ;;  %s437_s25 = sshll.u32 %s515_s12, 4  ;;  %s438_s25 = int_to_ptr.vmem [resolvable:$false] %s437_s25 }
  0x19   : > { %s360_s24 = sshll.u32 %s663_s23, 3  ;;  %s265_s23 = scalar_lea.sflag [#allocation4], %s187_s4 }
  0x1a   : > { %s205_s27 = scalar_lea.vmem %s651_s1, %s360_s24  ;;  %s195_s30 = scalar_lea.vmem %s650_s0, %s360_s24 }
  0x1b   : > { %v216_v1 = vld [vmem:[%s205_s27] sm:$0xff]  ;;  %s433_s24 = scalar_lea.vmem %s605_s6, 16  ;;  %s439_s26 = scalar_lea.vmem %s438_s25, 32 }
  0x1c   : > { %222 = vperm.xlu0 %428, %v216_v1   ;;  %v215_v4 = vld [vmem:[%s195_s30] sm:$0xff]  ;;  %p434_p12 = scmp.ne.s32.totalorder %s605_s6, %s433_s24  ;;  %p440_p1 = scmp.lt.s32.totalorder %s605_s6, %s438_s25 }
  0x1d   : > { %v220_v5 = vsel %vm219_vm0, %v215_v4, -3.4028235e+38  ;;  %p441_p2 = scmp.lt.s32.totalorder %s439_s26, %s433_s24 }
  0x1e   : > { %v228_v6 = vmul.f32 1.442695, %v220_v5  ;;  %p435_p13 = pnand %p434_p12, %p571_p4 }
  0x1f   : > { %p442_p3 = por %p441_p2, %p440_p1 }
  0x20   : > { %429 = vpow2.f32 %v228_v6  ;;  %p436_p0 = pneg %p435_p13 }
  0x22   : > { %p443_p5 = pnand %p442_p3, %p436_p0 }
  0x2a   : > { %v430_v7 = vpop.eup %429 }
  0x3b   : > { %230 = vadd.xlane.f32.xlu0 %v430_v7 }
  0x9b   : > { %v223_v8 = vpop.permute.xlu0 %222 }
  0x9c   : > { %vm224_vm1 = vcmp.eq.s32.totalorder %v218_v3, %v223_v8 }
  0x9d   : > { %v225_v9 = vsel %vm224_vm1, %v220_v5, 0.0 }
  0x9e   : > { %226 = vadd.xlane.f32.xlu1 %v225_v9 }
  0xc8   : > { %v231_v11 = vpop.xlane.xlu0 %230 }
  0xc9   : > { %431 = vlog2.f32 %v231_v11 }
  0xd3   : > { %v432_v14 = vpop.eup %431 }
  0xd4   : > { %v233_v16 = vmul.f32 0.6931472, %v432_v14 }
 0x12b   : > { %v227_v17 = vpop.xlane.xlu1 %226 }
 0x12c   : > { %v241_v18 = vsub.f32 %v233_v16, %v227_v17 }
 0x12e   : > { %v242_v20 = vsel %vm240_vm3, %v241_v18, 0.0 }
 0x12f   : > { %v244_v21 = vadd.f32 %v243_v19, %v242_v20 }
 0x131   : > { %246 = vst.msk [vmem:[#allocation2] sm:$0xff] %vm213_vm2, %v244_v21 }
 0x138   : > { %v250_v22 = vld [vmem:[#allocation2] sm:$0xff] }
 0x139   : > { %v251_v23 = vsel %vm213_vm2, %v250_v22, 0.0 }
 0x13a   : > { %252 = vadd.xlane.f32.xlu1 %v251_v23 }
 0x1c7   : > { %v253_v24 = vpop.xlane.xlu1 %252 }
 0x1c8   : > { %v254_v25 = vrot.slane %v253_v24, 4 }
 0x1ca   : > { %v255_v26 = vadd.f32 %v254_v25, %v253_v24 }
 0x1cc   : > { %v256_v27 = vrot.slane %v255_v26, 2 }
 0x1ce   : > { %v257_v28 = vadd.f32 %v256_v27, %v255_v26 }
 0x1d0   : > { %v258_v29 = vrot.slane %v257_v28, 1 }
 0x1d2   : > { %v259_v30 = vadd.f32 %v258_v29, %v257_v28 }
 0x1d4   : > { %369 = vpush %v259_v30 }
 0x205   : > { %s370_s8 = spop %369 }
 0x206   : > { %s261_s15 = smul.f32 0.125, %s370_s8 }
 0x208   : > { %v262_v31 = vstv %s261_s15 }
 0x209   : > { %263 = vst [vmem:[%s188_s5] sm:$0x1] %v262_v31 }
 0x20a   : > { %446 = shalt.err (!%p443_p5)
}
 0x20b   : > { %s447_s27 = scalar_lea.hbm %s603_s20, 16  ;;  %s451_s30 = scalar_lea.hbm %s652_s2, 32 }
 0x20c   : > { %p448_p6 = scmp.ne.s32.totalorder %s603_s20, %s447_s27  ;;  %p452_p10 = scmp.lt.u32.totalorder %s603_s20, %s652_s2 }
 0x20d   : > { %p453_p11 = scmp.lt.u32.totalorder %s451_s30, %s447_s27  ;;  %p455_p13 = scmp.lt.u32.totalorder %s447_s27, %s603_s20 }
 0x20e   : > { %p449_p7 = pnand %p448_p6, %p571_p4 }
 0x20f   : > { %p454_p12 = por %p453_p11, %p452_p10 }
 0x210   : > { %p450_p9 = pneg %p449_p7 }
 0x211   : > { %p456_p0 = por %p455_p13, %p454_p12 }
 0x213   : > { %p457_p1 = pnand %p456_p0, %p450_p9 }
 0x215   : > { %460 = shalt.err (!%p457_p1)
}
 0x216   : > { %371 = dma.vmem_to_hbm [thread:$0]  (%p571_p4), %s605_s6, 16, %s603_s20, %s265_s23  }
 0x217 PF: > { %p377_p2 = scmp.ge.s32.totalorder %s511_s14, 2  ;;  %s289_s5 = sand.u32 1, %s491_s9  }
 0x218   : > { %s290_s7 = scalar_lea.sflag [#allocation4], %s289_s5 }
 0x219   : > { %p374_p3 = pnand %p377_p2, %p578_p8 }
 0x21b   : > { %486 = dma.done.wait (!%p374_p3), %s290_s7, 16  }
 0x21c   : > { %488 = vsyncadd (!%p374_p3), %s290_s7, 4294967280  ;;  %s15_s14 = sadd.s32 1, %s511_s14   ;;  %s655_s9 = smov %s495_s10 }
 0x21d   : > { %p12_p5 = scmp.ge.s32.totalorder %s15_s14, 4   ;;  %s656_s10 = smov %s499_s11 }
 0x21e   : > { %s657_s11 = smov %s584_s22  ;;  %s658_s12 = smov %s507_s13 }
 0x21f   : > { %s659_s13 = smov %s661_s17  ;;  %14 = sbr.rel (!%p12_p5) target bundleno = 4 (0x4), region = 74 }
 0x226   :  { %294 = vsyncpa [#allocation4], 1 }
 0x227   :  { %296 = vsyncpa [#allocation4 + $0x1], 1 }

</bundles_post_ra>
